<compile_context>
chip_gen: v7x
topology: tpu7x:2x2x1
jax: 0.10.0
libtpu: 0.0.40
codegen_flags: <defaults>
</compile_context>

<pallas_src>
import jax
import jax.numpy as jnp
from jax.experimental import pallas as pl
from jax.experimental.pallas import tpu as pltpu

_LANE = 128


def _round_up(x, m):
    return (x + m - 1) // m * m


# ----------------------------------------------------------------------------
# Kernel
# ----------------------------------------------------------------------------
def lstm_cell_kernel(u_ref, h_ref, wu_ref, wh_ref, b_ref, c_ref,
                     h_out_ref, c_out_ref):
    """Grid = (hidden tiles j [outer], batch tiles i [inner]).

    For grid point (j, i):
      u_ref  : [tb, Inp]      input slice (compute dtype)
      h_ref  : [tb, Hp]       previous hidden slice (compute dtype)
      wu_ref : [Inp, 4*tn]    input->gates weights, columns [i|f|g|o] for
                              hidden units j*tn .. (j+1)*tn
      wh_ref : [Hp, 4*tn]     hidden->gates weights, same column layout
      b_ref  : [1, 4*tn]      f32 bias slice (same layout)
      c_ref  : [tb, tn]       previous cell state slice
    Outputs h_out_ref / c_out_ref : [tb, tn]
    """
    # Two MXU matmuls with f32 accumulation; bias add in f32.
    gates = (jnp.dot(u_ref[...], wu_ref[...],
                     preferred_element_type=jnp.float32)
             + jnp.dot(h_ref[...], wh_ref[...],
                       preferred_element_type=jnp.float32)
             + b_ref[...])

    tn = c_ref.shape[-1]
    # Lane-dense gate slices (tn is a multiple of 128).
    i_g = jax.nn.sigmoid(gates[:, 0 * tn:1 * tn])
    f_g = jax.nn.sigmoid(gates[:, 1 * tn:2 * tn])
    g_g = jnp.tanh(gates[:, 2 * tn:3 * tn])
    o_g = jax.nn.sigmoid(gates[:, 3 * tn:4 * tn])

    c_prev = c_ref[...].astype(jnp.float32)
    c_next = f_g * c_prev + i_g * g_g
    h_next = o_g * jnp.tanh(c_next)

    h_out_ref[...] = h_next.astype(h_out_ref.dtype)
    c_out_ref[...] = c_next.astype(c_out_ref.dtype)


# ----------------------------------------------------------------------------
# One-time parameter preparation (NOT in the per-step path)
# ----------------------------------------------------------------------------
def _reorder_gate_columns(Wt, Hp, n_h, tn):
    """Wt: [K, 4*H] with gate order [i|f|g|o] -> [K, 4*Hp] grouped per hidden
    tile j as contiguous [i|f|g|o] blocks of width tn."""
    K, fourH = Wt.shape
    H = fourH // 4
    W4 = Wt.reshape(K, 4, H)
    W4 = jnp.pad(W4, ((0, 0), (0, 0), (0, Hp - H)))
    return (W4.reshape(K, 4, n_h, tn)
               .transpose(0, 2, 1, 3)          # [K, n_h, 4, tn]
               .reshape(K, 4 * Hp))


def prepare_lstm_params(W, b, input_size, hidden_size,
                        param_dtype=jnp.bfloat16):
    """W: [4H, In+H] (PyTorch nn.Linear layout), b: [4H].

    Done once outside the step loop: split into Wu/Wh, transpose to
    [K, 4*Hp], pad K dims to lane alignment, regroup columns per hidden tile
    as [i|f|g|o] blocks, and cast weights to `param_dtype` (bf16 by default —
    a single-step cell is HBM-bound on the weight stream).  Bias stays f32.
    """
    In, H = input_size, hidden_size
    assert W.shape == (4 * H, In + H)
    assert b.shape == (4 * H,)

    Inp = _round_up(In, _LANE)
    Hp = _round_up(H, _LANE)

    # Hidden tile: prefer 256 (full MXU width on v6e/v7x) if it divides Hp
    # and the double-buffered weight block fits a conservative VMEM budget,
    # else 128.
    w_itemsize = jnp.dtype(param_dtype).itemsize
    tn = None
    for cand in (256, 128):
        if Hp % cand == 0 and 2 * (Inp + Hp) * 4 * cand * w_itemsize <= (40 << 20):
            tn = cand
            break
    if tn is None:
        tn = 128
    n_h = Hp // tn

    Wu = jnp.pad(W[:, :In].T, ((0, Inp - In), (0, 0)))     # [Inp, 4H]
    Wh = jnp.pad(W[:, In:].T, ((0, Hp - H), (0, 0)))       # [Hp, 4H]
    Wu = _reorder_gate_columns(Wu, Hp, n_h, tn).astype(param_dtype)
    Wh = _reorder_gate_columns(Wh, Hp, n_h, tn).astype(param_dtype)

    b4 = jnp.pad(b.reshape(4, H).astype(jnp.float32), ((0, 0), (0, Hp - H)))
    b4 = (b4.reshape(4, n_h, tn)
             .transpose(1, 0, 2)                            # [n_h, 4, tn]
             .reshape(1, 4 * Hp))

    return dict(Wu=Wu, Wh=Wh, b=b4,
                input_size=In, hidden_size=H,
                Inp=Inp, Hp=Hp, tn=tn,
                compute_dtype=jnp.dtype(param_dtype))


# ----------------------------------------------------------------------------
# Per-step wrapper
# ----------------------------------------------------------------------------
def lstm_cell(params, u, h, c):
    """u: [B, In], h: [B, H], c: [B, H] -> (h_next, c_next), each [B, H]."""
    In, H = params["input_size"], params["hidden_size"]
    Inp, Hp, tn = params["Inp"], params["Hp"], params["tn"]
    Wu, Wh, b4 = params["Wu"], params["Wh"], params["b"]
    cd = params["compute_dtype"]

    B = u.shape[0]
    row_align = 16 if jnp.dtype(cd).itemsize < 4 else 8
    tb = min(256, _round_up(max(B, 1), row_align))
    Bp = _round_up(B, tb)
    n_b, n_h = Bp // tb, Hp // tn
    # v7x has 2 TensorCores: best effort to expose >=2 parallel grid tiles.
    if n_b * n_h < 2 and tb % (2 * row_align) == 0:
        tb //= 2
        n_b = Bp // tb

    # Cast activations to the compute dtype; pad only when unaligned
    # (no-ops for aligned production shapes).
    u_p = u.astype(cd)
    h_p = h.astype(cd)
    c_p = c
    if Bp - B or Inp - In:
        u_p = jnp.pad(u_p, ((0, Bp - B), (0, Inp - In)))
    if Bp - B or Hp - H:
        h_p = jnp.pad(h_p, ((0, Bp - B), (0, Hp - H)))
        c_p = jnp.pad(c_p, ((0, Bp - B), (0, Hp - H)))

    # VMEM budget from actual (double-buffered) block sizes.
    w_bytes = (Inp + Hp) * 4 * tn * Wu.dtype.itemsize + 4 * tn * 4
    act_bytes = (tb * (Inp + Hp) * jnp.dtype(cd).itemsize
                 + tb * tn * c.dtype.itemsize)
    out_bytes = tb * tn * (h.dtype.itemsize + c.dtype.itemsize)
    vmem_needed = 2 * (w_bytes + act_bytes + out_bytes)
    vmem_limit = int(min(max(vmem_needed * 5 // 4 + (2 << 20), 8 << 20),
                         48 << 20))

    grid = (n_h, n_b)   # hidden OUTER so the weight tile stays VMEM-resident

    h_pad, c_pad = pl.pallas_call(
        lstm_cell_kernel,
        out_shape=(
            jax.ShapeDtypeStruct((Bp, Hp), h.dtype),
            jax.ShapeDtypeStruct((Bp, Hp), c.dtype),
        ),
        grid_spec=pltpu.PrefetchScalarGridSpec(
            num_scalar_prefetch=0,
            grid=grid,
            in_specs=[
                pl.BlockSpec((tb, Inp), lambda j, i: (i, 0)),        # u
                pl.BlockSpec((tb, Hp), lambda j, i: (i, 0)),         # h
                pl.BlockSpec((Inp, 4 * tn), lambda j, i: (0, j)),    # Wu
                pl.BlockSpec((Hp, 4 * tn), lambda j, i: (0, j)),     # Wh
                pl.BlockSpec((1, 4 * tn), lambda j, i: (0, j)),      # b
                pl.BlockSpec((tb, tn), lambda j, i: (i, j)),         # c
            ],
            out_specs=[
                pl.BlockSpec((tb, tn), lambda j, i: (i, j)),         # h_next
                pl.BlockSpec((tb, tn), lambda j, i: (i, j)),         # c_next
            ],
        ),
        compiler_params=pltpu.CompilerParams(
            dimension_semantics=("parallel", "parallel"),
            vmem_limit_bytes=vmem_limit,
        ),
    )(u_p, h_p, Wu, Wh, b4, c_p)

    if Bp - B or Hp - H:
        return h_pad[:B, :H], c_pad[:B, :H]
    return h_pad, c_pad


# ----------------------------------------------------------------------------
# Pure-JAX reference (mirrors the PyTorch module exactly)
# ----------------------------------------------------------------------------
def lstm_cell_ref(u, h, c, W, b):
    gates = jnp.concatenate([u, h], axis=1) @ W.T + b
    H = h.shape[1]
    i, f, g, o = (gates[:, 0:H], gates[:, H:2 * H],
                  gates[:, 2 * H:3 * H], gates[:, 3 * H:4 * H])
    i, f, o = jax.nn.sigmoid(i), jax.nn.sigmoid(f), jax.nn.sigmoid(o)
    g = jnp.tanh(g)
    c_next = f * c + i * g
    h_next = o * jnp.tanh(c_next)
    return h_next, c_next


# ----------------------------------------------------------------------------
# Tests
# ----------------------------------------------------------------------------
def _run_case(seed, B, input_size, hidden_size, param_dtype, atol, rtol):
    key = jax.random.PRNGKey(seed)
    ku, kh, kc, kw, kb = jax.random.split(key, 5)

    u = jax.random.normal(ku, (B, input_size), dtype=jnp.float32)
    h = jax.random.normal(kh, (B, hidden_size), dtype=jnp.float32)
    c = jax.random.normal(kc, (B, hidden_size), dtype=jnp.float32)

    fan_in = input_size + hidden_size
    bound = 1.0 / (fan_in ** 0.5)
    W = jax.random.uniform(kw, (4 * hidden_size, fan_in),
                           minval=-bound, maxval=bound, dtype=jnp.float32)
    b = jax.random.uniform(kb, (4 * hidden_size,),
                           minval=-bound, maxval=bound, dtype=jnp.float32)

    # One-time weight prep (transpose / pad / gate-tile reorder / cast).
    params = prepare_lstm_params(W, b, input_size, hidden_size,
                                 param_dtype=param_dtype)

    h_next, c_next = lstm_cell(params, u, h, c)
    jax.block_until_ready((h_next, c_next))

    h_ref, c_ref = lstm_cell_ref(u, h, c, W, b)
    assert h_next.shape == (B, hidden_size)
    assert c_next.shape == (B, hidden_size)
    assert jnp.allclose(h_next, h_ref, atol=atol, rtol=rtol), "h mismatch"
    assert jnp.allclose(c_next, c_ref, atol=atol, rtol=rtol), "c mismatch"


if __name__ == "__main__":
    # Exact f32 path, tiny single-tile grid (matches the original module spec).
    _run_case(seed=0, B=8, input_size=32, hidden_size=32,
              param_dtype=jnp.float32, atol=1e-5, rtol=1e-5)

    # bf16 compute path, multi-tile grid, non-128-divisible input_size,
    # batch padded to the 16-row bf16 alignment.
    _run_case(seed=1, B=24, input_size=200, hidden_size=384,
              param_dtype=jnp.bfloat16, atol=2e-2, rtol=2e-2)

    print("KERNEL_OK")
</pallas_src>

<mosaic_0001>
module attributes {stable_mosaic.version = 11 : i64} {
  func.func @lstm_cell_kernel(%arg0: i32, %arg1: i32, %arg2: memref<8x128xf32, #tpu.memory_space<vmem>>, %arg3: memref<8x128xf32, #tpu.memory_space<vmem>>, %arg4: memref<128x512xf32, #tpu.memory_space<vmem>>, %arg5: memref<128x512xf32, #tpu.memory_space<vmem>>, %arg6: memref<1x512xf32, #tpu.memory_space<vmem>>, %arg7: memref<8x128xf32, #tpu.memory_space<vmem>>, %arg8: memref<8x128xf32, #tpu.memory_space<vmem>>, %arg9: memref<8x128xf32, #tpu.memory_space<vmem>>) attributes {dimension_semantics = [#tpu.dimension_semantics<parallel>, #tpu.dimension_semantics<parallel>], iteration_bounds = array<i64: 1, 1>, scalar_prefetch = 0 : i64, scratch_operands = 0 : i64, tpu.core_type = #tpu.core_type<tc>, window_params = [{transform_indices = @transform_0, window_bounds = array<i64: 8, 128>}, {transform_indices = @transform_1, window_bounds = array<i64: 8, 128>}, {transform_indices = @transform_2, window_bounds = array<i64: 128, 512>}, {transform_indices = @transform_3, window_bounds = array<i64: 128, 512>}, {transform_indices = @transform_4, window_bounds = array<i64: 1, 512>}, {transform_indices = @transform_5, window_bounds = array<i64: 8, 128>}, {transform_indices = @transform_6, window_bounds = array<i64: 8, 128>}, {transform_indices = @transform_7, window_bounds = array<i64: 8, 128>}]} {
    %c0 = arith.constant 0 : index
    %c0_0 = arith.constant 0 : index
    %0 = vector.load %arg2[%c0, %c0_0] : memref<8x128xf32, #tpu.memory_space<vmem>>, vector<8x128xf32>
    %c0_1 = arith.constant 0 : index
    %c0_2 = arith.constant 0 : index
    %1 = vector.load %arg4[%c0_1, %c0_2] : memref<128x512xf32, #tpu.memory_space<vmem>>, vector<128x512xf32>
    %cst = arith.constant dense<0.000000e+00> : vector<8x512xf32>
    %2 = tpu.matmul %0, %1, %cst {dimension_numbers = #tpu.dot_dimension_numbers<[1], [0], [0], [1], [0, 0, 1, 1], [], []>} : vector<8x128xf32>, vector<128x512xf32>, vector<8x512xf32> -> vector<8x512xf32>
    %c0_3 = arith.constant 0 : index
    %c0_4 = arith.constant 0 : index
    %3 = vector.load %arg3[%c0_3, %c0_4] : memref<8x128xf32, #tpu.memory_space<vmem>>, vector<8x128xf32>
    %c0_5 = arith.constant 0 : index
    %c0_6 = arith.constant 0 : index
    %4 = vector.load %arg5[%c0_5, %c0_6] : memref<128x512xf32, #tpu.memory_space<vmem>>, vector<128x512xf32>
    %cst_7 = arith.constant dense<0.000000e+00> : vector<8x512xf32>
    %5 = tpu.matmul %3, %4, %cst_7 {dimension_numbers = #tpu.dot_dimension_numbers<[1], [0], [0], [1], [0, 0, 1, 1], [], []>} : vector<8x128xf32>, vector<128x512xf32>, vector<8x512xf32> -> vector<8x512xf32>
    %6 = arith.addf %2, %5 : vector<8x512xf32>
    %c0_8 = arith.constant 0 : index
    %c0_9 = arith.constant 0 : index
    %7 = vector.load %arg6[%c0_8, %c0_9] : memref<1x512xf32, #tpu.memory_space<vmem>>, vector<1x512xf32>
    %8 = vector.broadcast %7 : vector<1x512xf32> to vector<8x512xf32>
    %9 = arith.addf %6, %8 : vector<8x512xf32>
    %10 = vector.extract_strided_slice %9 {offsets = [0, 0], sizes = [8, 128], strides = [1, 1]} : vector<8x512xf32> to vector<8x128xf32>
    %11 = arith.negf %10 : vector<8x128xf32>
    %12 = math.exp %11 : vector<8x128xf32>
    %cst_10 = arith.constant 1.000000e+00 : f32
    %13 = vector.broadcast %cst_10 : f32 to vector<8x128xf32>
    %14 = arith.addf %13, %12 : vector<8x128xf32>
    %15 = arith.divf %13, %14 : vector<8x128xf32>
    %16 = vector.extract_strided_slice %9 {offsets = [0, 128], sizes = [8, 128], strides = [1, 1]} : vector<8x512xf32> to vector<8x128xf32>
    %17 = arith.negf %16 : vector<8x128xf32>
    %18 = math.exp %17 : vector<8x128xf32>
    %cst_11 = arith.constant 1.000000e+00 : f32
    %19 = vector.broadcast %cst_11 : f32 to vector<8x128xf32>
    %20 = arith.addf %19, %18 : vector<8x128xf32>
    %21 = arith.divf %19, %20 : vector<8x128xf32>
    %22 = vector.extract_strided_slice %9 {offsets = [0, 256], sizes = [8, 128], strides = [1, 1]} : vector<8x512xf32> to vector<8x128xf32>
    %23 = math.tanh %22 : vector<8x128xf32>
    %24 = vector.extract_strided_slice %9 {offsets = [0, 384], sizes = [8, 128], strides = [1, 1]} : vector<8x512xf32> to vector<8x128xf32>
    %25 = arith.negf %24 : vector<8x128xf32>
    %26 = math.exp %25 : vector<8x128xf32>
    %cst_12 = arith.constant 1.000000e+00 : f32
    %27 = vector.broadcast %cst_12 : f32 to vector<8x128xf32>
    %28 = arith.addf %27, %26 : vector<8x128xf32>
    %29 = arith.divf %27, %28 : vector<8x128xf32>
    %c0_13 = arith.constant 0 : index
    %c0_14 = arith.constant 0 : index
    %30 = vector.load %arg7[%c0_13, %c0_14] : memref<8x128xf32, #tpu.memory_space<vmem>>, vector<8x128xf32>
    %31 = arith.mulf %21, %30 : vector<8x128xf32>
    %32 = arith.mulf %15, %23 : vector<8x128xf32>
    %33 = arith.addf %31, %32 : vector<8x128xf32>
    %34 = math.tanh %33 : vector<8x128xf32>
    %35 = arith.mulf %29, %34 : vector<8x128xf32>
    %c0_15 = arith.constant 0 : index
    %c0_16 = arith.constant 0 : index
    %36 = vector.load %arg8[%c0_15, %c0_16] : memref<8x128xf32, #tpu.memory_space<vmem>>, vector<8x128xf32>
    tpu.vector_store %arg8[%c0_15, %c0_16], %35 {strides = array<i32>} : memref<8x128xf32, #tpu.memory_space<vmem>>, vector<8x128xf32>,
    %c0_17 = arith.constant 0 : index
    %c0_18 = arith.constant 0 : index
    %37 = vector.load %arg9[%c0_17, %c0_18] : memref<8x128xf32, #tpu.memory_space<vmem>>, vector<8x128xf32>
    tpu.vector_store %arg9[%c0_17, %c0_18], %33 {strides = array<i32>} : memref<8x128xf32, #tpu.memory_space<vmem>>, vector<8x128xf32>,
    return
  }
  func.func @transform_0(%arg0: i32, %arg1: i32) -> (i32, i32) {
    %c0_i32 = arith.constant 0 : i32
    %c0_i32_0 = arith.constant 0 : i32
    return %arg1, %c0_i32 : i32, i32
  }
  func.func @transform_1(%arg0: i32, %arg1: i32) -> (i32, i32) {
    %c0_i32 = arith.constant 0 : i32
    %c0_i32_0 = arith.constant 0 : i32
    return %arg1, %c0_i32 : i32, i32
  }
  func.func @transform_2(%arg0: i32, %arg1: i32) -> (i32, i32) {
    %c0_i32 = arith.constant 0 : i32
    %c0_i32_0 = arith.constant 0 : i32
    return %c0_i32, %arg0 : i32, i32
  }
  func.func @transform_3(%arg0: i32, %arg1: i32) -> (i32, i32) {
    %c0_i32 = arith.constant 0 : i32
    %c0_i32_0 = arith.constant 0 : i32
    return %c0_i32, %arg0 : i32, i32
  }
  func.func @transform_4(%arg0: i32, %arg1: i32) -> (i32, i32) {
    %c0_i32 = arith.constant 0 : i32
    %c0_i32_0 = arith.constant 0 : i32
    return %c0_i32, %arg0 : i32, i32
  }
  func.func @transform_5(%arg0: i32, %arg1: i32) -> (i32, i32) {
    %c0_i32 = arith.constant 0 : i32
    return %arg1, %arg0 : i32, i32
  }
  func.func @transform_6(%arg0: i32, %arg1: i32) -> (i32, i32) {
    %c0_i32 = arith.constant 0 : i32
    return %arg1, %arg0 : i32, i32
  }
  func.func @transform_7(%arg0: i32, %arg1: i32) -> (i32, i32) {
    %c0_i32 = arith.constant 0 : i32
    return %arg1, %arg0 : i32, i32
  }
}

</mosaic_0001>

<bundles_post_ra>
// kernel: tpu_custom_call.1
= control target key start
LH: loop header
LB: loop body
LE: loop exit
PB: predicated region body
PF: predicated region fallthrough
CT: control target
= control target key end

     0   :  { %13 = vsyncpa [#allocation3], 0  ;;  %s1009_s0 = inlined_call_operand.hbm [shape: f32[8,128], index: 0, kind: input, shape index: {}]   ;;  %s1010_s1 = inlined_call_operand.hbm [shape: f32[8,128], index: 1, kind: input, shape index: {}]   ;;  %s1011_s2 = inlined_call_operand.hbm [shape: f32[128,512], index: 2, kind: input, shape index: {}]   ;;  %s1012_s3 = inlined_call_operand.hbm [shape: f32[128,512], index: 3, kind: input, shape index: {}]   ;;  %s1013_s4 = inlined_call_operand.vmem [shape: f32[1,512], index: 4, kind: input, shape index: {}]   ;;  %s1014_s5 = inlined_call_operand.vmem [shape: f32[8,128], index: 5, kind: input, shape index: {}]   ;;  %s1015_s6 = inlined_call_operand.hbm [shape: f32[8,128], index: 6, kind: output, shape index: {0}]   ;;  %s1016_s7 = inlined_call_operand.hbm [shape: f32[8,128], index: 7, kind: output, shape index: {1}]  }
   0x1   :  { %14 = vsyncpa [#allocation6], 0 }
   0x2   :  { %15 = vsyncpa [#allocation9], 0 }
   0x3   :  { %16 = vsyncpa [#allocation4], 0 }
   0x4   :  { %17 = vsyncpa [#allocation12], 0  ;;  %s878_s24 = smov [#allocation5]   ;;  %s879_s26 = smov [#allocation2]  }
   0x5   :  { %s34_s25 = sshll.u32 %s878_s24, 4  ;;  %s24_s27 = sshll.u32 %s879_s26, 4  ;;  %s35_s25 = int_to_ptr.vmem [resolvable:$true] %s34_s25  ;;  %s25_s27 = int_to_ptr.vmem [resolvable:$true] %s24_s27 }
   0x6   :  { %s736_s30 = scalar_lea.hbm %s1010_s1, 128 }
   0x7   :  { %p737_p0 = scmp.ne.s32.totalorder %s1010_s1, %s736_s30  ;;  %p740_p1 = scmp.lt.u32.totalorder %s736_s30, %s1010_s1 }
   0x9   :  { %p742_p2 = pnand %p740_p1, %p737_p0 }
   0xb   :  { %745 = shalt.err (!%p742_p2)
}
   0xc   :  { %s746_s12 = scalar_lea.vmem %s35_s25, 128  ;;  %p751_p4 = scmp.lt.s32.totalorder %s35_s25, %s35_s25 }
   0xd   :  { %p747_p3 = scmp.ne.s32.totalorder %s35_s25, %s746_s12  ;;  %p752_p5 = scmp.lt.s32.totalorder %s746_s12, %s746_s12 }
   0xf   :  { %p753_p6 = por %p752_p5, %p751_p4 }
  0x11   :  { %p754_p7 = pnand %p753_p6, %p747_p3 }
  0x13   :  { %757 = shalt.err (!%p754_p7)
}
  0x14   :  { %37 = dma.hbm_to_vmem [thread:$0]  %s1010_s1, 128, %s35_s25, [#allocation6]  }
  0x15   :  { %s758_s17 = scalar_lea.hbm %s1009_s0, 128 }
  0x16   :  { %p759_p8 = scmp.ne.s32.totalorder %s1009_s0, %s758_s17  ;;  %p762_p9 = scmp.lt.u32.totalorder %s758_s17, %s1009_s0 }
  0x18   :  { %p764_p10 = pnand %p762_p9, %p759_p8 }
  0x1a   :  { %767 = shalt.err (!%p764_p10)
}
  0x1b   :  { %s768_s22 = scalar_lea.vmem %s25_s27, 128  ;;  %p773_p12 = scmp.lt.s32.totalorder %s25_s27, %s25_s27 }
  0x1c   :  { %p769_p11 = scmp.ne.s32.totalorder %s25_s27, %s768_s22  ;;  %p774_p13 = scmp.lt.s32.totalorder %s768_s22, %s768_s22 }
  0x1e   :  { %p775_p0 = por %p774_p13, %p773_p12 }
  0x20   :  { %p776_p1 = pnand %p775_p0, %p769_p11 }
  0x22   :  { %779 = shalt.err (!%p776_p1)
}
  0x23   :  { %27 = dma.hbm_to_vmem [thread:$0]  %s1009_s0, 128, %s25_s27, [#allocation3]  }
  0x24   :  { %s880_s24 = smov [#allocation7]   ;;  %s780_s29 = scalar_lea.hbm %s1011_s2, 8192 }
  0x25   :  { %s43_s25 = sshll.u32 %s880_s24, 4  ;;  %p781_p2 = scmp.ne.s32.totalorder %s1011_s2, %s780_s29  ;;  %s44_s25 = int_to_ptr.vmem [resolvable:$true] %s43_s25 }
  0x26   :  { %p784_p3 = scmp.lt.u32.totalorder %s780_s29, %s1011_s2 }
  0x28   :  { %p786_p4 = pnand %p784_p3, %p781_p2 }
  0x2a   :  { %789 = shalt.err (!%p786_p4)
}
  0x2b   :  { %s790_s11 = scalar_lea.vmem %s44_s25, 8192  ;;  %p795_p6 = scmp.lt.s32.totalorder %s44_s25, %s44_s25 }
  0x2c   :  { %p791_p5 = scmp.ne.s32.totalorder %s44_s25, %s790_s11  ;;  %p796_p7 = scmp.lt.s32.totalorder %s790_s11, %s790_s11 }
  0x2e   :  { %p797_p8 = por %p796_p7, %p795_p6 }
  0x30   :  { %p798_p9 = pnand %p797_p8, %p791_p5 }
  0x32   :  { %801 = shalt.err (!%p798_p9)
}
  0x33   :  { %s881_s0 = smov 512   ;;  %s882_s27 = smov 32  }
  0x34   :  { %49 = dma.hbm_to_vmem [thread:$0]  %s1011_s2, 8192, %s44_s25, [#allocation6], %s881_s0, %s881_s0, %s882_s27  }
  0x35   :  { %s883_s14 = smov [#allocation8]   ;;  %s802_s18 = scalar_lea.hbm %s1012_s3, 8192 }
  0x36   :  { %s55_s15 = sshll.u32 %s883_s14, 4  ;;  %p803_p10 = scmp.ne.s32.totalorder %s1012_s3, %s802_s18  ;;  %s56_s15 = int_to_ptr.vmem [resolvable:$true] %s55_s15 }
  0x37   :  { %p806_p11 = scmp.lt.u32.totalorder %s802_s18, %s1012_s3 }
  0x39   :  { %p808_p12 = pnand %p806_p11, %p803_p10 }
  0x3b   :  { %811 = shalt.err (!%p808_p12)
}
  0x3c   :  { %s812_s1 = scalar_lea.vmem %s56_s15, 8192  ;;  %p817_p0 = scmp.lt.s32.totalorder %s56_s15, %s56_s15 }
  0x3d   :  { %p813_p13 = scmp.ne.s32.totalorder %s56_s15, %s812_s1  ;;  %p818_p1 = scmp.lt.s32.totalorder %s812_s1, %s812_s1 }
  0x3f   :  { %p819_p2 = por %p818_p1, %p817_p0 }
  0x41   :  { %p820_p3 = pnand %p819_p2, %p813_p13 }
  0x43   :  { %823 = shalt.err (!%p820_p3)
}
  0x44   :  { %61 = dma.hbm_to_vmem [thread:$0]  %s1012_s3, 8192, %s56_s15, [#allocation9], %s881_s0, %s881_s0, %s882_s27  }
  0x45   :  { %868 = dma.done.wait [#allocation3], 128  }
  0x46   :  { %869 = vsyncadd [#allocation3], 4294967168 }
  0x47   :  { %870 = dma.done.wait [#allocation6], 8320  }
  0x48   :  { %871 = vsyncadd [#allocation6], 4294958976 }
  0x49   :  { %872 = dma.done.wait [#allocation9], 8192  }
  0x4a   :  { %873 = vsyncadd [#allocation9], 4294959104  ;;  %v884_v0 = vmov 0.0   ;;  %v145_v1 = vld [vmem:[#allocation8 + $0x8] sm:$0xff]  ;;  %v147_v3 = vld [vmem:[#allocation8 + $0x18] sm:$0xff]  ;;  %s885_s26 = smov [#allocation11]  }
  0x4b   :  { %272 = vmatprep.mubr.f32.mxu0 %v884_v0  ;;  %343 = vmatprep.mubr.f32.mxu1 %v884_v0  ;;  %v149_v2 = vld [vmem:[#allocation8 + $0x28] sm:$0xff]  ;;  %v151_v5 = vld [vmem:[#allocation8 + $0x38] sm:$0xff]  ;;  %v144_v6 = vld [vmem:[#allocation8] sm:$0xff]  ;;  %s561_s28 = sshll.u32 %s885_s26, 4  ;;  %s562_s28 = int_to_ptr.vmem [resolvable:$true] %s561_s28 }
  0x4c   :  { %v579_v4 = vpack.c.bf16 %v149_v2, %v145_v1  ;;  %v148_v7 = vld [vmem:[#allocation8 + $0x20] sm:$0xff]  ;;  %v611_v8 = vpack.c.bf16 %v151_v5, %v147_v3  ;;  %v146_v10 = vld [vmem:[#allocation8 + $0x10] sm:$0xff]  ;;  %v153_v12 = vld [vmem:[#allocation8 + $0x48] sm:$0xff]  ;;  %s824_s29 = scalar_lea.vmem %s562_s28, 128  ;;  %p829_p5 = scmp.lt.s32.totalorder %s562_s28, %s562_s28 }
  0x4d   :  { %v581_v9 = vpack.c.bf16 %v148_v7, %v144_v6  ;;  %v150_v11 = vld [vmem:[#allocation8 + $0x30] sm:$0xff]  ;;  %v157_v14 = vld [vmem:[#allocation8 + $0x68] sm:$0xff]  ;;  %v155_v15 = vld [vmem:[#allocation8 + $0x58] sm:$0xff]  ;;  %p825_p4 = scmp.ne.s32.totalorder %s562_s28, %s824_s29  ;;  %p830_p6 = scmp.lt.s32.totalorder %s824_s29, %s824_s29 }
  0x4e   :  { %580 = vmatprep.subr.bf16.mxu0 %v579_v4  ;;  %v613_v13 = vpack.c.bf16 %v150_v11, %v146_v10  ;;  %v159_v16 = vld [vmem:[#allocation8 + $0x78] sm:$0xff]  ;;  %612 = vmatprep.subr.bf16.mxu1 %v611_v8  ;;  %v583_v17 = vpack.c.bf16 %v157_v14, %v153_v12  ;;  %v152_v19 = vld [vmem:[#allocation8 + $0x40] sm:$0xff]  ;;  %v154_v21 = vld [vmem:[#allocation8 + $0x50] sm:$0xff] }
  0x4f   :  { %582 = vmatpush1.bf16.msra.mxu0 %v581_v9  ;;  %v615_v18 = vpack.c.bf16 %v159_v16, %v155_v15  ;;  %v156_v20 = vld [vmem:[#allocation8 + $0x60] sm:$0xff]  ;;  %v158_v23 = vld [vmem:[#allocation8 + $0x70] sm:$0xff]  ;;  %v161_v24 = vld [vmem:[#allocation8 + $0x88] sm:$0xff]  ;;  %p831_p7 = por %p830_p6, %p829_p5 }
  0x50   :  { %614 = vmatpush1.bf16.msra.mxu1 %v613_v13  ;;  %v585_v22 = vpack.c.bf16 %v156_v20, %v152_v19  ;;  %v165_v25 = vld [vmem:[#allocation8 + $0xa8] sm:$0xff]  ;;  %584 = vmatprep.subr.bf16.mxu0 %v583_v17  ;;  %v617_v26 = vpack.c.bf16 %v158_v23, %v154_v21  ;;  %v163_v28 = vld [vmem:[#allocation8 + $0x98] sm:$0xff]  ;;  %v160_v30 = vld [vmem:[#allocation8 + $0x80] sm:$0xff] }
  0x51   :  { %616 = vmatprep.subr.bf16.mxu1 %v615_v18  ;;  %v587_v27 = vpack.c.bf16 %v165_v25, %v161_v24  ;;  %v167_v29 = vld [vmem:[#allocation8 + $0xb8] sm:$0xff]  ;;  %v164_v32 = vld [vmem:[#allocation8 + $0xa0] sm:$0xff]  ;;  %v162_v33 = vld [vmem:[#allocation8 + $0x90] sm:$0xff]  ;;  %p832_p8 = pnand %p831_p7, %p825_p4 }
  0x52   :  { %v619_v31 = vpack.c.bf16 %v167_v29, %v163_v28  ;;  %v166_v34 = vld [vmem:[#allocation8 + $0xb0] sm:$0xff]  ;;  %v589_v35 = vpack.c.bf16 %v164_v32, %v160_v30  ;;  %v169_v36 = vld [vmem:[#allocation8 + $0xc8] sm:$0xff]  ;;  %v171_v38 = vld [vmem:[#allocation8 + $0xd8] sm:$0xff] }
  0x53   :  { %586 = vmatpush1.bf16.msra.mxu0 %v585_v22  ;;  %v173_v37 = vld [vmem:[#allocation8 + $0xe8] sm:$0xff]  ;;  %v621_v39 = vpack.c.bf16 %v166_v34, %v162_v33  ;;  %v175_v41 = vld [vmem:[#allocation8 + $0xf8] sm:$0xff]  ;;  %v168_v42 = vld [vmem:[#allocation8 + $0xc0] sm:$0xff] }
  0x54   :  { %618 = vmatpush1.bf16.msra.mxu1 %v617_v26  ;;  %588 = vmatprep.subr.bf16.mxu0 %v587_v27  ;;  %v591_v40 = vpack.c.bf16 %v173_v37, %v169_v36  ;;  %v172_v43 = vld [vmem:[#allocation8 + $0xe0] sm:$0xff]  ;;  %v623_v44 = vpack.c.bf16 %v175_v41, %v171_v38  ;;  %v170_v45 = vld [vmem:[#allocation8 + $0xd0] sm:$0xff]  ;;  %v177_v47 = vld [vmem:[#allocation8 + $0x108] sm:$0xff] }
  0x55   :  { %620 = vmatprep.subr.bf16.mxu1 %v619_v31  ;;  %v174_v46 = vld [vmem:[#allocation8 + $0xf0] sm:$0xff]  ;;  %v181_v48 = vld [vmem:[#allocation8 + $0x128] sm:$0xff]  ;;  %v179_v49 = vld [vmem:[#allocation8 + $0x118] sm:$0xff]  ;;  %v593_v51 = vpack.c.bf16 %v172_v43, %v168_v42 }
  0x56   :  { %v183_v50 = vld [vmem:[#allocation8 + $0x138] sm:$0xff]  ;;  %v625_v52 = vpack.c.bf16 %v174_v46, %v170_v45  ;;  %v595_v53 = vpack.c.bf16 %v181_v48, %v177_v47  ;;  %v176_v54 = vld [vmem:[#allocation8 + $0x100] sm:$0xff]  ;;  %v178_v56 = vld [vmem:[#allocation8 + $0x110] sm:$0xff] }
  0x57   :  { %590 = vmatpush1.bf16.msra.mxu0 %v589_v35  ;;  %v180_v55 = vld [vmem:[#allocation8 + $0x120] sm:$0xff]  ;;  %v627_v57 = vpack.c.bf16 %v183_v50, %v179_v49  ;;  %v182_v58 = vld [vmem:[#allocation8 + $0x130] sm:$0xff]  ;;  %v185_v59 = vld [vmem:[#allocation8 + $0x148] sm:$0xff] }
  0x58   :  { %622 = vmatpush1.bf16.msra.mxu1 %v621_v39  ;;  %592 = vmatprep.subr.bf16.mxu0 %v591_v40  ;;  %v189_v60 = vld [vmem:[#allocation8 + $0x168] sm:$0xff]  ;;  %v187_v61 = vld [vmem:[#allocation8 + $0x158] sm:$0xff]  ;;  %v597_v63 = vpack.c.bf16 %v180_v55, %v176_v54  ;;  %v629_v1 = vpack.c.bf16 %v182_v58, %v178_v56  ;;  %v184_v3 = vld [vmem:[#allocation8 + $0x140] sm:$0xff] }
  0x59   :  { %624 = vmatprep.subr.bf16.mxu1 %v623_v44  ;;  %v191_v62 = vld [vmem:[#allocation8 + $0x178] sm:$0xff]  ;;  %v599_v2 = vpack.c.bf16 %v189_v60, %v185_v59  ;;  %v188_v4 = vld [vmem:[#allocation8 + $0x160] sm:$0xff]  ;;  %v186_v5 = vld [vmem:[#allocation8 + $0x150] sm:$0xff] }
  0x5a   :  { %v631_v6 = vpack.c.bf16 %v191_v62, %v187_v61  ;;  %v190_v7 = vld [vmem:[#allocation8 + $0x170] sm:$0xff]  ;;  %v193_v8 = vld [vmem:[#allocation8 + $0x188] sm:$0xff]  ;;  %v195_v10 = vld [vmem:[#allocation8 + $0x198] sm:$0xff]  ;;  %v601_v12 = vpack.c.bf16 %v188_v4, %v184_v3 }
  0x5b   :  { %594 = vmatpush1.bf16.msra.mxu0 %v593_v51  ;;  %v197_v9 = vld [vmem:[#allocation8 + $0x1a8] sm:$0xff]  ;;  %v199_v11 = vld [vmem:[#allocation8 + $0x1b8] sm:$0xff]  ;;  %v633_v13 = vpack.c.bf16 %v190_v7, %v186_v5  ;;  %v192_v15 = vld [vmem:[#allocation8 + $0x180] sm:$0xff] }
  0x5c   :  { %626 = vmatpush1.bf16.msra.mxu1 %v625_v52  ;;  %596 = vmatprep.subr.bf16.mxu0 %v595_v53  ;;  %v603_v14 = vpack.c.bf16 %v197_v9, %v193_v8  ;;  %v196_v16 = vld [vmem:[#allocation8 + $0x1a0] sm:$0xff]  ;;  %v194_v17 = vld [vmem:[#allocation8 + $0x190] sm:$0xff]  ;;  %v635_v18 = vpack.c.bf16 %v199_v11, %v195_v10  ;;  %v201_v20 = vld [vmem:[#allocation8 + $0x1c8] sm:$0xff] }
  0x5d   :  { %628 = vmatprep.subr.bf16.mxu1 %v627_v57  ;;  %v198_v19 = vld [vmem:[#allocation8 + $0x1b0] sm:$0xff]  ;;  %v205_v21 = vld [vmem:[#allocation8 + $0x1e8] sm:$0xff]  ;;  %v203_v22 = vld [vmem:[#allocation8 + $0x1d8] sm:$0xff]  ;;  %v605_v24 = vpack.c.bf16 %v196_v16, %v192_v15 }
  0x5e   :  { %v207_v23 = vld [vmem:[#allocation8 + $0x1f8] sm:$0xff]  ;;  %v637_v25 = vpack.c.bf16 %v198_v19, %v194_v17  ;;  %v607_v26 = vpack.c.bf16 %v205_v21, %v201_v20  ;;  %v200_v27 = vld [vmem:[#allocation8 + $0x1c0] sm:$0xff]  ;;  %v202_v29 = vld [vmem:[#allocation8 + $0x1d0] sm:$0xff] }
  0x5f   :  { %598 = vmatpush1.bf16.msra.mxu0 %v597_v63  ;;  %v204_v28 = vld [vmem:[#allocation8 + $0x1e0] sm:$0xff]  ;;  %v639_v30 = vpack.c.bf16 %v207_v23, %v203_v22  ;;  %v206_v31 = vld [vmem:[#allocation8 + $0x1f0] sm:$0xff]  ;;  %v80_v32 = vld [vmem:[#allocation7 + $0x8] sm:$0xff] }
  0x60   :  { %630 = vmatpush1.bf16.msra.mxu1 %v629_v1  ;;  %600 = vmatprep.subr.bf16.mxu0 %v599_v2  ;;  %v84_v33 = vld [vmem:[#allocation7 + $0x28] sm:$0xff]  ;;  %v82_v34 = vld [vmem:[#allocation7 + $0x18] sm:$0xff]  ;;  %v609_v36 = vpack.c.bf16 %v204_v28, %v200_v27  ;;  %v641_v37 = vpack.c.bf16 %v206_v31, %v202_v29  ;;  %v79_v39 = vld [vmem:[#allocation7] sm:$0xff] }
  0x61   :  { %632 = vmatprep.subr.bf16.mxu1 %v631_v6  ;;  %v86_v35 = vld [vmem:[#allocation7 + $0x38] sm:$0xff]  ;;  %v643_v38 = vpack.c.bf16 %v84_v33, %v80_v32  ;;  %v83_v40 = vld [vmem:[#allocation7 + $0x20] sm:$0xff]  ;;  %v81_v41 = vld [vmem:[#allocation7 + $0x10] sm:$0xff] }
  0x62   :  { %v675_v42 = vpack.c.bf16 %v86_v35, %v82_v34  ;;  %v85_v43 = vld [vmem:[#allocation7 + $0x30] sm:$0xff]  ;;  %v88_v44 = vld [vmem:[#allocation7 + $0x48] sm:$0xff]  ;;  %v90_v46 = vld [vmem:[#allocation7 + $0x58] sm:$0xff]  ;;  %v645_v49 = vpack.c.bf16 %v83_v40, %v79_v39 }
  0x63   :  { %602 = vmatpush1.bf16.msra.mxu0 %v601_v12  ;;  %v92_v45 = vld [vmem:[#allocation7 + $0x68] sm:$0xff]  ;;  %v94_v47 = vld [vmem:[#allocation7 + $0x78] sm:$0xff]  ;;  %v677_v50 = vpack.c.bf16 %v85_v43, %v81_v41  ;;  %v87_v52 = vld [vmem:[#allocation7 + $0x40] sm:$0xff] }
  0x64   :  { %634 = vmatpush1.bf16.msra.mxu1 %v633_v13  ;;  %604 = vmatprep.subr.bf16.mxu0 %v603_v14  ;;  %v143_v48 = vld [vmem:[#allocation5] sm:$0xff]  ;;  %v647_v51 = vpack.c.bf16 %v92_v45, %v88_v44  ;;  %v91_v53 = vld [vmem:[#allocation7 + $0x60] sm:$0xff]  ;;  %v89_v54 = vld [vmem:[#allocation7 + $0x50] sm:$0xff]  ;;  %v679_v55 = vpack.c.bf16 %v94_v47, %v90_v46 }
  0x65   :  { %636 = vmatprep.subr.bf16.mxu1 %v635_v18  ;;  %v93_v56 = vld [vmem:[#allocation7 + $0x70] sm:$0xff]  ;;  %v96_v57 = vld [vmem:[#allocation7 + $0x88] sm:$0xff]  ;;  %v98_v59 = vld [vmem:[#allocation7 + $0x98] sm:$0xff]  ;;  %v649_v61 = vpack.c.bf16 %v91_v53, %v87_v52 }
  0x66   :  { %v100_v58 = vld [vmem:[#allocation7 + $0xa8] sm:$0xff]  ;;  %v102_v60 = vld [vmem:[#allocation7 + $0xb8] sm:$0xff]  ;;  %v681_v62 = vpack.c.bf16 %v93_v56, %v89_v54  ;;  %v95_v1 = vld [vmem:[#allocation7 + $0x80] sm:$0xff] }
  0x67   :  { %606 = vmatpush1.bf16.msra.mxu0 %v605_v24  ;;  %v651_v63 = vpack.c.bf16 %v100_v58, %v96_v57  ;;  %v99_v2 = vld [vmem:[#allocation7 + $0xa0] sm:$0xff]  ;;  %v97_v3 = vld [vmem:[#allocation7 + $0x90] sm:$0xff]  ;;  %v683_v4 = vpack.c.bf16 %v102_v60, %v98_v59  ;;  %v104_v6 = vld [vmem:[#allocation7 + $0xc8] sm:$0xff] }
  0x68   :  { %638 = vmatpush1.bf16.msra.mxu1 %v637_v25  ;;  %608 = vmatprep.subr.bf16.mxu0 %v607_v26  ;;  %v101_v5 = vld [vmem:[#allocation7 + $0xb0] sm:$0xff]  ;;  %v108_v7 = vld [vmem:[#allocation7 + $0xe8] sm:$0xff]  ;;  %v106_v8 = vld [vmem:[#allocation7 + $0xd8] sm:$0xff]  ;;  %v653_v10 = vpack.c.bf16 %v99_v2, %v95_v1 }
  0x69   :  { %640 = vmatprep.subr.bf16.mxu1 %v639_v30  ;;  %v110_v9 = vld [vmem:[#allocation7 + $0xf8] sm:$0xff]  ;;  %v685_v11 = vpack.c.bf16 %v101_v5, %v97_v3  ;;  %v655_v12 = vpack.c.bf16 %v108_v7, %v104_v6  ;;  %v103_v13 = vld [vmem:[#allocation7 + $0xc0] sm:$0xff]  ;;  %v105_v15 = vld [vmem:[#allocation7 + $0xd0] sm:$0xff]  ;;  %v494_v5 = vlaneseq }
  0x6a   :  { %v107_v14 = vld [vmem:[#allocation7 + $0xe0] sm:$0xff]  ;;  %v687_v16 = vpack.c.bf16 %v110_v9, %v106_v8  ;;  %v109_v17 = vld [vmem:[#allocation7 + $0xf0] sm:$0xff]  ;;  %v112_v18 = vld [vmem:[#allocation7 + $0x108] sm:$0xff] }
  0x6b   :  { %610 = vmatpush1.bf16.msra.mxu0 %v609_v36  ;;  %v116_v19 = vld [vmem:[#allocation7 + $0x128] sm:$0xff]  ;;  %v114_v20 = vld [vmem:[#allocation7 + $0x118] sm:$0xff]  ;;  %v657_v22 = vpack.c.bf16 %v107_v14, %v103_v13  ;;  %v111_v24 = vld [vmem:[#allocation7 + $0x100] sm:$0xff]  ;;  %v495_v6 = vshrl.u32 %v494_v5, 7 }
  0x6c   :  { %642 = vmatpush1.bf16.msra.mxu1 %v641_v37  ;;  %644 = vmatprep.subr.bf16.mxu0 %v643_v38  ;;  %v118_v21 = vld [vmem:[#allocation7 + $0x138] sm:$0xff]  ;;  %v659_v23 = vpack.c.bf16 %v116_v19, %v112_v18  ;;  %v115_v25 = vld [vmem:[#allocation7 + $0x120] sm:$0xff]  ;;  %v113_v26 = vld [vmem:[#allocation7 + $0x110] sm:$0xff] }
  0x6d   :  { %676 = vmatprep.subr.bf16.mxu1 %v675_v42  ;;  %v691_v27 = vpack.c.bf16 %v118_v21, %v114_v20  ;;  %v117_v28 = vld [vmem:[#allocation7 + $0x130] sm:$0xff]  ;;  %v120_v29 = vld [vmem:[#allocation7 + $0x148] sm:$0xff]  ;;  %v122_v31 = vld [vmem:[#allocation7 + $0x158] sm:$0xff]  ;;  %v661_v33 = vpack.c.bf16 %v115_v25, %v111_v24  ;;  %v496_v7 = vsub.s32 0, %v495_v6  ;;  %v500_v9 = vsub.s32 1, %v495_v6 }
  0x6e   :  { %273 = vmatmul.mubr.f32.vlgmr.msra.gmra.mrb[0].mxu0 %v143_v48  ;;  %v124_v30 = vld [vmem:[#allocation7 + $0x168] sm:$0xff]  ;;  %v126_v32 = vld [vmem:[#allocation7 + $0x178] sm:$0xff]  ;;  %v693_v34 = vpack.c.bf16 %v117_v28, %v113_v26  ;;  %v119_v36 = vld [vmem:[#allocation7 + $0x140] sm:$0xff]  ;;  %v508_v13 = vsub.s32 3, %v495_v6 }
  0x6f   :  { %344 = vmatmul.mubr.f32.vlgmr.msra.gmra.mrb[0].mxu1 %v143_v48  ;;  %646 = vmatpush1.bf16.msra.mxu0 %v645_v49  ;;  %v663_v35 = vpack.c.bf16 %v124_v30, %v120_v29  ;;  %v123_v37 = vld [vmem:[#allocation7 + $0x160] sm:$0xff]  ;;  %v121_v38 = vld [vmem:[#allocation7 + $0x150] sm:$0xff]  ;;  %v695_v39 = vpack.c.bf16 %v126_v32, %v122_v31  ;;  %v128_v41 = vld [vmem:[#allocation7 + $0x188] sm:$0xff] }
  0x70   :  { %678 = vmatpush1.bf16.msra.mxu1 %v677_v50  ;;  %648 = vmatprep.subr.bf16.mxu0 %v647_v51  ;;  %v125_v40 = vld [vmem:[#allocation7 + $0x170] sm:$0xff]  ;;  %v132_v42 = vld [vmem:[#allocation7 + $0x1a8] sm:$0xff]  ;;  %v130_v43 = vld [vmem:[#allocation7 + $0x198] sm:$0xff]  ;;  %v665_v45 = vpack.c.bf16 %v123_v37, %v119_v36 }
  0x71   :  { %680 = vmatprep.subr.bf16.mxu1 %v679_v55  ;;  %414 = vmatprep.mubr.f32.mxu0 %v884_v0  ;;  %v134_v44 = vld [vmem:[#allocation7 + $0x1b8] sm:$0xff]  ;;  %v697_v46 = vpack.c.bf16 %v125_v40, %v121_v38  ;;  %v667_v47 = vpack.c.bf16 %v132_v42, %v128_v41  ;;  %v127_v48 = vld [vmem:[#allocation7 + $0x180] sm:$0xff]  ;;  %v129_v50 = vld [vmem:[#allocation7 + $0x190] sm:$0xff] }
  0x72   :  { %485 = vmatprep.mubr.f32.mxu1 %v884_v0  ;;  %v689_v0 = vpack.c.bf16 %v109_v17, %v105_v15  ;;  %v131_v49 = vld [vmem:[#allocation7 + $0x1a0] sm:$0xff]  ;;  %v699_v51 = vpack.c.bf16 %v134_v44, %v130_v43  ;;  %v133_v52 = vld [vmem:[#allocation7 + $0x1b0] sm:$0xff]  ;;  %v136_v53 = vld [vmem:[#allocation7 + $0x1c8] sm:$0xff] }
  0x73   :  { %650 = vmatpush1.bf16.msra.mxu0 %v649_v61  ;;  %v140_v54 = vld [vmem:[#allocation7 + $0x1e8] sm:$0xff]  ;;  %v138_v55 = vld [vmem:[#allocation7 + $0x1d8] sm:$0xff]  ;;  %v669_v57 = vpack.c.bf16 %v131_v49, %v127_v48  ;;  %v701_v58 = vpack.c.bf16 %v133_v52, %v129_v50  ;;  %v135_v60 = vld [vmem:[#allocation7 + $0x1c0] sm:$0xff] }
  0x74   :  { %682 = vmatpush1.bf16.msra.mxu1 %v681_v62  ;;  %652 = vmatprep.subr.bf16.mxu0 %v651_v63  ;;  %v142_v56 = vld [vmem:[#allocation7 + $0x1f8] sm:$0xff]  ;;  %v671_v59 = vpack.c.bf16 %v140_v54, %v136_v53  ;;  %v139_v61 = vld [vmem:[#allocation7 + $0x1e0] sm:$0xff]  ;;  %v137_v63 = vld [vmem:[#allocation7 + $0x1d0] sm:$0xff] }
  0x75   :  { %684 = vmatprep.subr.bf16.mxu1 %v683_v4  ;;  %v703_v62 = vpack.c.bf16 %v142_v56, %v138_v55  ;;  %v141_v1 = vld [vmem:[#allocation7 + $0x1f0] sm:$0xff]  ;;  %v673_v2 = vpack.c.bf16 %v139_v61, %v135_v60 }
  0x76   :  { %v705_v3 = vpack.c.bf16 %v141_v1, %v137_v63  ;;  %v78_v4 = vld [vmem:[#allocation2] sm:$0xff] }
  0x77   :  { %654 = vmatpush1.bf16.msra.mxu0 %v653_v10  ;;  %v492_v8 = vld [vmem:[%s1013_s4] sm:$0xf] }
  0x78   :  { %686 = vmatpush1.bf16.msra.mxu1 %v685_v11  ;;  %656 = vmatprep.subr.bf16.mxu0 %v655_v12  ;;  %v497_v10 = vrot.slane %v492_v8, %v496_v7  ;;  %v501_v11 = vrot.slane %v492_v8, %v500_v9  ;;  %v509_v21 = vrot.slane %v492_v8, %v508_v13  ;;  %v537_v32 = vld [vmem:[%s1014_s5] sm:$0xff] }
  0x79   :  { %688 = vmatprep.subr.bf16.mxu1 %v687_v16 }
  0x7b   :  { %658 = vmatpush1.bf16.msra.mxu0 %v657_v22  ;;  %v504_v22 = vsub.s32 2, %v495_v6 }
  0x7c   :  { %690 = vmatpush1.bf16.msra.mxu1 %v689_v0  ;;  %660 = vmatprep.subr.bf16.mxu0 %v659_v23 }
  0x7d   :  { %692 = vmatprep.subr.bf16.mxu1 %v691_v27  ;;  %v505_v23 = vrot.slane %v492_v8, %v504_v22 }
  0x7f   :  { %662 = vmatpush1.bf16.msra.mxu0 %v661_v33 }
  0x80   :  { %694 = vmatpush1.bf16.msra.mxu1 %v693_v34  ;;  %664 = vmatprep.subr.bf16.mxu0 %v663_v35 }
  0x81   :  { %696 = vmatprep.subr.bf16.mxu1 %v695_v39 }
  0x83   :  { %666 = vmatpush1.bf16.msra.mxu0 %v665_v45 }
  0x84   :  { %698 = vmatpush1.bf16.msra.mxu1 %v697_v46  ;;  %668 = vmatprep.subr.bf16.mxu0 %v667_v47 }
  0x85   :  { %700 = vmatprep.subr.bf16.mxu1 %v699_v51 }
  0x87   :  { %670 = vmatpush1.bf16.msra.mxu0 %v669_v57 }
  0x88   :  { %702 = vmatpush1.bf16.msra.mxu1 %v701_v58  ;;  %672 = vmatprep.subr.bf16.mxu0 %v671_v59 }
  0x89   :  { %704 = vmatprep.subr.bf16.mxu1 %v703_v62 }
  0x8b   :  { %674 = vmatpush1.bf16.msra.mxu0 %v673_v2 }
  0x8c   :  { %706 = vmatpush1.bf16.msra.mxu1 %v705_v3 }
  0x8e   :  { %415 = vmatmul.mubr.f32.vlgmr.msra.gmra.mrb[0].mxu0 %v78_v4 }
  0x8f   :  { %486 = vmatmul.mubr.f32.vlgmr.msra.gmra.mrb[0].mxu1 %v78_v4 }
 0x161   :  { %v416_v12 = vpop.f32.mrb[0].mxu0 }
 0x162   :  { %v514_v14 = vadd.f32 %v497_v10, %v416_v12  ;;  %v487_v15 = vpop.f32.mrb[0].mxu1  ;;  %v418_v16 = vpop.f32.mrb[1].mxu0 }
 0x163   :  { %v515_v17 = vadd.f32 %v501_v11, %v418_v16  ;;  %v489_v18 = vpop.f32.mrb[1].mxu1  ;;  %v516_v25 = vadd.f32 %v505_v23, %v487_v15 }
 0x164   :  { %v576_v19 = vmul.f32 -1.442695, %v514_v14  ;;  %v517_v0 = vadd.f32 %v509_v21, %v489_v18 }
 0x165   :  { %v577_v20 = vmul.f32 -1.442695, %v515_v17 }
 0x166   :  { %720 = vpow2.f32 %v576_v19  ;;  %v578_v24 = vmul.f32 -1.442695, %v517_v0 }
 0x167   :  { %722 = vpow2.f32 %v577_v20 }
 0x168   :  { %724 = vpow2.f32 %v578_v24 }
 0x169   :  { %726 = vtanh.f32 %v516_v25 }
 0x170   :  { %v721_v26 = vpop.eup %720 }
 0x171   :  { %v723_v27 = vpop.eup %722  ;;  %v521_v28 = vadd.f32 1.0, %v721_v26 }
 0x172   :  { %v527_v29 = vadd.f32 1.0, %v723_v27  ;;  %v725_v30 = vpop.eup %724 }
 0x173   :  { %728 = vrcp.f32 %v521_v28  ;;  %v727_v31 = vpop.eup %726  ;;  %v534_v36 = vadd.f32 1.0, %v725_v30 }
 0x174   :  { %730 = vrcp.f32 %v527_v29 }
 0x175   :  { %732 = vrcp.f32 %v534_v36 }
 0x17d   :  { %v729_v33 = vpop.eup %728 }
 0x17e   :  { %v731_v34 = vpop.eup %730  ;;  %v539_v35 = vmul.f32 %v729_v33, %v727_v31 }
 0x17f   :  { %v538_v37 = vmul.f32 %v731_v34, %v537_v32 }
 0x181   :  { %v540_v38 = vadd.f32 %v539_v35, %v538_v37 }
 0x183   :  { %734 = vtanh.f32 %v540_v38  ;;  %544 = vst [vmem:[#allocation11] sm:$0xff] %v540_v38 }
 0x184   :  { %835 = shalt.err (!%p832_p8)
}
 0x185   :  { %s836_s8 = scalar_lea.hbm %s1016_s7, 128 }
 0x186   :  { %p837_p9 = scmp.ne.s32.totalorder %s1016_s7, %s836_s8  ;;  %p840_p10 = scmp.lt.u32.totalorder %s836_s8, %s1016_s7 }
 0x188   :  { %p842_p11 = pnand %p840_p10, %p837_p9 }
 0x18a   :  { %845 = shalt.err (!%p842_p11)
}
 0x18b   :  { %564 = dma.vmem_to_hbm [thread:$0]  %s562_s28, 128, %s1016_s7, [#allocation12]   ;;  %v733_v39 = vpop.eup %732 }
 0x18c   :  { %s886_s13 = smov [#allocation10]  }
 0x18d   :  { %s551_s14 = sshll.u32 %s886_s13, 4  ;;  %v735_v40 = vpop.eup %734  ;;  %s552_s14 = int_to_ptr.vmem [resolvable:$true] %s551_s14 }
 0x18e   :  { %v542_v41 = vmul.f32 %v735_v40, %v733_v39  ;;  %s846_s15 = scalar_lea.vmem %s552_s14, 128  ;;  %p851_p13 = scmp.lt.s32.totalorder %s552_s14, %s552_s14 }
 0x18f   :  { %p847_p12 = scmp.ne.s32.totalorder %s552_s14, %s846_s15  ;;  %p852_p0 = scmp.lt.s32.totalorder %s846_s15, %s846_s15 }
 0x190   :  { %543 = vst [vmem:[#allocation10] sm:$0xff] %v542_v41 }
 0x191   :  { %p853_p1 = por %p852_p0, %p851_p13 }
 0x193   :  { %p854_p2 = pnand %p853_p1, %p847_p12 }
 0x195   :  { %857 = shalt.err (!%p854_p2)
}
 0x196   :  { %s858_s18 = scalar_lea.hbm %s1015_s6, 128 }
 0x197   :  { %p859_p3 = scmp.ne.s32.totalorder %s1015_s6, %s858_s18  ;;  %p862_p4 = scmp.lt.u32.totalorder %s858_s18, %s1015_s6 }
 0x199   :  { %p864_p5 = pnand %p862_p4, %p859_p3 }
 0x19b   :  { %867 = shalt.err (!%p864_p5)
}
 0x19c   :  { %554 = dma.vmem_to_hbm [thread:$0]  %s552_s14, 128, %s1015_s6, [#allocation4]  }
 0x19d   :  { %874 = dma.done.wait [#allocation4], 128  }
 0x19e   :  { %875 = vsyncadd [#allocation4], 4294967168 }
 0x19f   :  { %876 = dma.done.wait [#allocation12], 128  }
 0x1a0   :  { %877 = vsyncadd [#allocation12], 4294967168 }
 0x1a1   :  { %571 = vsyncpa [#allocation3], 1 }
 0x1a2   :  { %572 = vsyncpa [#allocation6], 1 }
 0x1a3   :  { %573 = vsyncpa [#allocation9], 1 }
 0x1a4   :  { %574 = vsyncpa [#allocation4], 1 }
 0x1a5   :  { %575 = vsyncpa [#allocation12], 1 }

</bundles_post_ra>
